<compile_context>
chip_gen: v6e
topology: v6e:2x2x1
jax: 0.10.0
libtpu: 0.0.40
codegen_flags: <defaults>
</compile_context>

<pallas_src>
import jax
import jax.numpy as jnp
import numpy as np
from jax.experimental import pallas as pl
from jax.experimental.pallas import tpu as pltpu

n_qubits = 2
_LANE = 128


def vqa_kernel(coef_ref, xT_ref, out_ref):
    # xT_ref: (2, TILE_B) f32 -- batch on lanes, qubit index on sublanes.
    a0 = xT_ref[0:1, :]                    # ry angle on qubit 0, shape (1, TILE_B)
    a1 = xT_ref[1:2, :]                    # ry angle on qubit 1, shape (1, TILE_B)

    cos_w3 = coef_ref[0]                   # cos(w3)            (hoisted scalar, SMEM)
    sin_w3_cos_w1 = coef_ref[1]            # sin(w3) * cos(w1)  (hoisted scalar, SMEM)

    # <Z_1> closed form: cos(w3) cos(a0) cos(a1) - sin(w3) cos(w1) sin(a1)
    out_ref[...] = (cos_w3 * jnp.cos(a0) * jnp.cos(a1)
                    - sin_w3_cos_w1 * jnp.sin(a1))


def vqa_layer_forward(x, weights, tile_b=65536):
    """VQALayer.forward: x (B, 2) ry angles, weights (4,) -> (B, 1) of <Z_1>."""
    B = x.shape[0]
    assert x.shape[1] == n_qubits

    # Hoist the per-call scalar trig out of the grid-iterated body.
    w = weights.astype(jnp.float32)
    coef = jnp.stack([jnp.cos(w[3]), jnp.sin(w[3]) * jnp.cos(w[1])])

    # Batch -> lane (last) dim; pad batch up to a lane-aligned tile multiple.
    tile_b = max(_LANE, (int(tile_b) // _LANE) * _LANE)
    b_ceil = ((B + _LANE - 1) // _LANE) * _LANE
    tile_b = min(tile_b, b_ceil)
    b_pad = ((B + tile_b - 1) // tile_b) * tile_b
    num_tiles = b_pad // tile_b

    xT = jnp.pad(jnp.transpose(x.astype(jnp.float32)),
                 ((0, 0), (0, b_pad - B)))                       # (2, b_pad)

    out = pl.pallas_call(
        vqa_kernel,
        out_shape=jax.ShapeDtypeStruct((1, b_pad), jnp.float32),
        grid=(num_tiles,),
        in_specs=[
            pl.BlockSpec(memory_space=pltpu.MemorySpace.SMEM),       # coef (2,)
            pl.BlockSpec((n_qubits, tile_b), lambda i: (0, i)),      # xT tile
        ],
        out_specs=pl.BlockSpec((1, tile_b), lambda i: (0, i)),       # lane-dense
        compiler_params=pltpu.CompilerParams(
            dimension_semantics=("parallel",)),                      # v7x: 2 TCs
    )(coef, xT)

    return out[0, :B].reshape(B, 1)


def statevector_reference(x, w):
    """Independent exact 2-qubit statevector simulation of create_vqa_circuit
    followed by <Z on qubit 1> (i.e. SparsePauliOp('ZI'))."""
    x = np.asarray(x, dtype=np.float64)
    w = np.asarray(w, dtype=np.float64)
    I2 = np.eye(2, dtype=np.complex128)
    Z = np.diag([1.0, -1.0]).astype(np.complex128)

    def ry(t):
        c, s = np.cos(t / 2.0), np.sin(t / 2.0)
        return np.array([[c, -s], [s, c]], dtype=np.complex128)

    def rz(t):
        return np.diag([np.exp(-1j * t / 2.0), np.exp(1j * t / 2.0)])

    # basis ordering |q1 q0>, index = 2*q1 + q0
    def on_q0(g):
        return np.kron(I2, g)

    def on_q1(g):
        return np.kron(g, I2)

    # CX with control q0, target q1 in this basis
    CX = np.array([[1, 0, 0, 0],
                   [0, 0, 0, 1],
                   [0, 0, 1, 0],
                   [0, 1, 0, 0]], dtype=np.complex128)
    ZI = on_q1(Z)  # 'ZI' == Z on qubit 1

    U_fixed = (on_q1(ry(w[3])) @ on_q0(ry(w[2])) @ CX
               @ on_q1(rz(w[1])) @ on_q0(rz(w[0])))

    evs = []
    for row in x:
        psi0 = np.zeros(4, dtype=np.complex128)
        psi0[0] = 1.0
        psi = U_fixed @ (on_q1(ry(row[1])) @ on_q0(ry(row[0]))) @ psi0
        evs.append(np.real(np.conj(psi) @ (ZI @ psi)))
    return np.array(evs, dtype=np.float32).reshape(-1, 1)


if __name__ == "__main__":
    key = jax.random.PRNGKey(0)
    kx, kw, kx2 = jax.random.split(key, 3)

    # Small shapes consistent with the module: batch=8, n_qubits=2 angle inputs.
    B = 8
    x = jax.random.normal(kx, (B, n_qubits), jnp.float32)
    weights = jax.random.normal(kw, (4,), jnp.float32)   # VQALayer.weights

    out = jax.block_until_ready(vqa_layer_forward(x, weights))
    ref = statevector_reference(np.asarray(x), np.asarray(weights))
    assert out.shape == (B, 1)
    assert np.allclose(np.asarray(out), ref, atol=1e-5), "kernel vs statevector mismatch"

    # Exercise the batch grid + ragged-tail padding path (B not a tile multiple).
    B2 = 300
    x2 = jax.random.normal(kx2, (B2, n_qubits), jnp.float32)
    out2 = jax.block_until_ready(vqa_layer_forward(x2, weights, tile_b=128))
    ref2 = statevector_reference(np.asarray(x2), np.asarray(weights))
    assert out2.shape == (B2, 1)
    assert np.allclose(np.asarray(out2), ref2, atol=1e-5), "tiled path mismatch"

    print("KERNEL_OK")
</pallas_src>

<mosaic_0001>
module attributes {stable_mosaic.version = 11 : i64} {
  func.func @vqa_kernel(%arg0: i32, %arg1: memref<2xf32, #tpu.memory_space<smem>>, %arg2: memref<2x128xf32, #tpu.memory_space<vmem>>, %arg3: memref<1x128xf32, #tpu.memory_space<vmem>>) attributes {dimension_semantics = [#tpu.dimension_semantics<parallel>], iteration_bounds = array<i64: 1>, scalar_prefetch = 0 : i64, scratch_operands = 0 : i64, tpu.core_type = #tpu.core_type<tc>, window_params = [{transform_indices = @transform_0, window_bounds = array<i64: 2>}, {transform_indices = @transform_1, window_bounds = array<i64: 2, 128>}, {transform_indices = @transform_2, window_bounds = array<i64: 1, 128>}]} {
    %c0 = arith.constant 0 : index
    %c0_0 = arith.constant 0 : index
    %0 = vector.load %arg2[%c0, %c0_0] : memref<2x128xf32, #tpu.memory_space<vmem>>, vector<1x128xf32>
    %c1 = arith.constant 1 : index
    %c0_1 = arith.constant 0 : index
    %1 = vector.load %arg2[%c1, %c0_1] : memref<2x128xf32, #tpu.memory_space<vmem>>, vector<1x128xf32>
    %c0_2 = arith.constant 0 : index
    %2 = memref.load %arg1[%c0_2] : memref<2xf32, #tpu.memory_space<smem>>
    %c1_3 = arith.constant 1 : index
    %3 = memref.load %arg1[%c1_3] : memref<2xf32, #tpu.memory_space<smem>>
    %4 = math.cos %0 : vector<1x128xf32>
    %5 = vector.broadcast %2 : f32 to vector<1x128xf32>
    %6 = arith.mulf %5, %4 : vector<1x128xf32>
    %7 = math.cos %1 : vector<1x128xf32>
    %8 = arith.mulf %6, %7 : vector<1x128xf32>
    %9 = math.sin %1 : vector<1x128xf32>
    %10 = vector.broadcast %3 : f32 to vector<1x128xf32>
    %11 = arith.mulf %10, %9 : vector<1x128xf32>
    %12 = arith.subf %8, %11 : vector<1x128xf32>
    %c0_4 = arith.constant 0 : index
    %c0_5 = arith.constant 0 : index
    %13 = vector.load %arg3[%c0_4, %c0_5] : memref<1x128xf32, #tpu.memory_space<vmem>>, vector<1x128xf32>
    tpu.vector_store %arg3[%c0_4, %c0_5], %12 {strides = array<i32>} : memref<1x128xf32, #tpu.memory_space<vmem>>, vector<1x128xf32>,
    return
  }
  func.func @transform_0(%arg0: i32) -> i32 {
    %c0_i32 = arith.constant 0 : i32
    %c0_i32_0 = arith.constant 0 : i32
    return %c0_i32 : i32
  }
  func.func @transform_1(%arg0: i32) -> (i32, i32) {
    %c0_i32 = arith.constant 0 : i32
    %c0_i32_0 = arith.constant 0 : i32
    return %c0_i32, %arg0 : i32, i32
  }
  func.func @transform_2(%arg0: i32) -> (i32, i32) {
    %c0_i32 = arith.constant 0 : i32
    %c0_i32_0 = arith.constant 0 : i32
    return %c0_i32, %arg0 : i32, i32
  }
}

</mosaic_0001>

<bundles_post_ra>
// kernel: tpu_custom_call.1
= control target key start
LH: loop header
LB: loop body
LE: loop exit
PB: predicated region body
PF: predicated region fallthrough
CT: control target
= control target key end

     0   :  { %7 = vsyncpa [#allocation5], 0  ;;  %s571_s0 = inlined_call_operand.hbm [shape: f32[2], index: 0, kind: input, shape index: {}]   ;;  %s572_s1 = inlined_call_operand.hbm [shape: f32[2,128], index: 1, kind: input, shape index: {}]   ;;  %s573_s2 = inlined_call_operand.hbm [shape: f32[1,128], index: 2, kind: output, shape index: {}]  }
   0x1   :  { %8 = vsyncpa [#allocation3], 0 }
   0x2   :  { %9 = vsyncpa [#allocation4], 0  ;;  %s464_s9 = smov [#allocation2]   ;;  %s465_s12 = smov [#allocation6]  }
   0x3   :  { %17 = dma.hbm_to_smem %s571_s0, 16, %s464_s9, [#allocation5]  }
   0x4   :  { %s24_s13 = sshll.u32 %s465_s12, 4  ;;  %s25_s13 = int_to_ptr.vmem [resolvable:$true] %s24_s13 }
   0x5   :  { %s426_s14 = scalar_lea.vmem %s25_s13, 32  ;;  %p431_p1 = scmp.lt.s32.totalorder %s25_s13, %s25_s13 }
   0x6   :  { %p427_p0 = scmp.ne.s32.totalorder %s25_s13, %s426_s14  ;;  %p432_p2 = scmp.lt.s32.totalorder %s426_s14, %s426_s14 }
   0x8   :  { %p433_p3 = por %p432_p2, %p431_p1 }
   0xa   :  { %p434_p4 = pnand %p433_p3, %p427_p0 }
   0xc   :  { %437 = shalt.err (!%p434_p4)
}
   0xd   :  { %27 = dma.hbm_to_vmem [thread:$0]  %s572_s1, 32, %s25_s13, [#allocation3]  }
   0xe   :  { %458 = dma.done.wait [#allocation5], 16  }
   0xf   :  { %459 = vsyncadd [#allocation5], 4294967280 }
  0x10   :  { %460 = dma.done.wait [#allocation3], 32  }
  0x11   :  { %461 = vsyncadd [#allocation3], 4294967264 }
  0x12   :  { %34 = sfence }
  0x13   :  { %v494_v0 = vld [vmem:[#allocation6] sm:$0x1]  ;;  %v498_v3 = vld [vmem:[#allocation6 + $0x1] sm:$0x1]  ;;  %v466_v20 = vmov 683565275  }
  0x14   :  { %v39_v1 = vand.u32 2147483647, %v494_v0  ;;  %v42_v2 = vand.u32 2139095040, %v494_v0  ;;  %v147_v7 = vand.u32 2139095040, %v498_v3  ;;  %v144_v8 = vand.u32 2147483647, %v498_v3 }
  0x15   :  { %v467_v22 = vmov 2475754826   ;;  %v468_v24 = vmov 2131351028   ;;  %v469_v26 = vmov 2102212464  }
  0x16   :  { %v43_v4 = vshrl.u32 %v42_v2, 23  ;;  %v46_v5 = vand.u32 8388607, %v39_v1  ;;  %v148_v10 = vshrl.u32 %v147_v7, 23  ;;  %v151_v14 = vand.u32 8388607, %v144_v8 }
  0x17   :  { %v470_v28 = vmov 920167782   ;;  %v471_v36 = vmov 1326507024   ;;  %vm41_vm14 = vcmp.lt.s32.totalorder %v494_v0, 0  ;;  %s37_s0 = sld [smem:[#allocation2]] }
  0x18   :  { %v373_v6 = vadd.s32 4294967169, %v43_v4  ;;  %v47_v11 = vor.u32 8388608, %v46_v5  ;;  %v377_v12 = vadd.s32 4294967169, %v148_v10  ;;  %v152_v30 = vor.u32 8388608, %v151_v14  ;;  %s563_s1 = sld [smem:[#allocation2 + $0x1]]  ;;  %s472_s17 = smov [#allocation7]  }
  0x19   :  { %vm546_vm15 = vcmp.le.f32.partialorder %v39_v1, 0.7853982  ;;  %s362_s18 = sshll.u32 %s472_s17, 4  ;;  %s363_s18 = int_to_ptr.vmem [resolvable:$true] %s362_s18 }
  0x1a   :  { %v49_v9 = vadd.s32 1, %v373_v6  ;;  %v506_v17 = vshll.u32 %v47_v11, 8  ;;  %v154_v18 = vadd.s32 1, %v377_v12  ;;  %v192_v58 = vshll.u32 %v152_v30, 8  ;;  %s438_s19 = scalar_lea.vmem %s363_s18, 16  ;;  %s442_s20 = scalar_lea.vmem %s363_s18, 32 }
  0x1b   :  { %p439_p5 = scmp.ne.s32.totalorder %s363_s18, %s438_s19  ;;  %p443_p6 = scmp.lt.s32.totalorder %s363_s18, %s363_s18 }
  0x1c   :  { %vm50_vm0 = vcmp.gt.s32.totalorder %v49_v9, 0  ;;  %vm155_vm4 = vcmp.gt.s32.totalorder %v154_v18, 0  ;;  %p444_p7 = scmp.lt.s32.totalorder %s442_s20, %s438_s19 }
  0x1d   :  { %v51_v13 = vsel %vm50_vm0, %v49_v9, 0  ;;  %v156_v43 = vsel %vm155_vm4, %v154_v18, 0  ;;  %vm146_vm0 = vcmp.lt.s32.totalorder %v498_v3, 0 }
  0x1e   :  { %v52_v15 = vshrl.u32 %v51_v13, 5  ;;  %v53_v16 = vand.u32 31, %v51_v13  ;;  %v157_v53 = vshrl.u32 %v156_v43, 5  ;;  %v158_v54 = vand.u32 31, %v156_v43  ;;  %p445_p8 = por %p444_p7, %p443_p6 }
  0x20   :  { %v54_v19 = vsub.s32 32, %v53_v16  ;;  %v56_v21 = vshll.u32 %v466_v20, %v53_v16  ;;  %v59_v23 = vshll.u32 %v467_v22, %v53_v16  ;;  %v62_v25 = vshll.u32 %v468_v24, %v53_v16  ;;  %p446_p9 = pnand %p445_p8, %p439_p5 }
  0x21   :  { %v65_v27 = vshll.u32 %v469_v26, %v53_v16  ;;  %v68_v29 = vshll.u32 %v470_v28, %v53_v16  ;;  %vm71_vm1 = vcmp.lt.s32.totalorder %v52_v15, 1  ;;  %vm72_vm2 = vcmp.lt.s32.totalorder %v52_v15, 2 }
  0x22   :  { %v55_v31 = vshrl.u32 %v466_v20, %v54_v19  ;;  %v57_v32 = vshrl.u32 %v467_v22, %v54_v19  ;;  %v60_v33 = vshrl.u32 %v468_v24, %v54_v19  ;;  %v63_v34 = vshrl.u32 %v469_v26, %v54_v19 }
  0x23   :  { %v66_v35 = vshrl.u32 %v470_v28, %v54_v19  ;;  %v69_v37 = vshrl.u32 %v471_v36, %v54_v19  ;;  %vm74_vm3 = vcmp.lt.s32.totalorder %v52_v15, 4  ;;  %vm73_vm5 = vcmp.lt.s32.totalorder %v52_v15, 3 }
  0x24   :  { %v58_v38 = vor.u32 %v57_v32, %v56_v21  ;;  %v61_v39 = vor.u32 %v60_v33, %v59_v23  ;;  %v64_v40 = vor.u32 %v63_v34, %v62_v25  ;;  %v159_v63 = vsub.s32 32, %v158_v54 }
  0x25   :  { %v67_v41 = vor.u32 %v66_v35, %v65_v27  ;;  %v70_v42 = vor.u32 %v69_v37, %v68_v29  ;;  %v161_v2 = vshll.u32 %v466_v20, %v158_v54  ;;  %v164_v4 = vshll.u32 %v467_v22, %v158_v54 }
  0x26   :  { %v75_v44 = vsel %vm71_vm1, %v55_v31, %v58_v38  ;;  %v76_v45 = vsel %vm74_vm3, %v64_v40, 2102212464  ;;  %v79_v46 = vsel %vm71_vm1, %v58_v38, %v61_v39  ;;  %v83_v47 = vsel %vm71_vm1, %v61_v39, %v64_v40 }
  0x27   :  { %v77_v48 = vsel %vm73_vm5, %v61_v39, %v76_v45  ;;  %v80_v49 = vsel %vm74_vm3, %v67_v41, 920167782  ;;  %v84_v50 = vsel %vm74_vm3, %v70_v42, 1326507024  ;;  %v167_v5 = vshll.u32 %v468_v24, %v158_v54 }
  0x28   :  { %v81_v51 = vsel %vm73_vm5, %v64_v40, %v80_v49  ;;  %v85_v52 = vsel %vm73_vm5, %v67_v41, %v84_v50  ;;  %v78_v55 = vsel %vm72_vm2, %v75_v44, %v77_v48  ;;  %v170_v7 = vshll.u32 %v469_v26, %v158_v54 }
  0x29   :  { %v82_v56 = vsel %vm72_vm2, %v79_v46, %v81_v51  ;;  %v86_v57 = vsel %vm72_vm2, %v83_v47, %v85_v52  ;;  %v94_v6 = vmul.u32 %v506_v17, %v78_v55  ;;  %v173_v9 = vshll.u32 %v470_v28, %v158_v54 }
  0x2a   :  { %v515_v59 = vmul.u32.u64.low %v506_v17, %v86_v57  ;;  %v516_v60 = vmul.u32.u64.high %v506_v17, %v86_v57, %v515_v59  ;;  %v519_v61 = vmul.u32.u64.low %v506_v17, %v82_v56  ;;  %v520_v62 = vmul.u32.u64.high %v506_v17, %v82_v56, %v519_v61 }
  0x2b   :  { %vm176_vm6 = vcmp.lt.s32.totalorder %v157_v53, 1  ;;  %v160_v10 = vshrl.u32 %v466_v20, %v159_v63  ;;  %v162_v11 = vshrl.u32 %v467_v22, %v159_v63  ;;  %v165_v12 = vshrl.u32 %v468_v24, %v159_v63 }
  0x2c   :  { %v168_v13 = vshrl.u32 %v469_v26, %v159_v63  ;;  %vm96_vm7 = vc.u32 %v516_v60, %v519_v61  ;;  %v97_v14 = vadd.s32 1, %v520_v62  ;;  %v171_v15 = vshrl.u32 %v470_v28, %v159_v63 }
  0x2d   :  { %vm177_vm8 = vcmp.lt.s32.totalorder %v157_v53, 2  ;;  %v163_v16 = vor.u32 %v162_v11, %v161_v2  ;;  %v166_v18 = vor.u32 %v165_v12, %v164_v4  ;;  %v174_v21 = vshrl.u32 %v471_v36, %v159_v63 }
  0x2e   :  { %v169_v19 = vor.u32 %v168_v13, %v167_v5  ;;  %v98_v23 = vsel %vm96_vm7, %v97_v14, %v520_v62  ;;  %v172_v17 = vor.u32 %v171_v15, %v170_v7  ;;  %vm178_vm9 = vcmp.lt.s32.totalorder %v157_v53, 3 }
  0x2f   :  { %vm179_vm10 = vcmp.lt.s32.totalorder %v157_v53, 4  ;;  %v99_v25 = vadd.s32 %v98_v23, %v94_v6  ;;  %v175_v20 = vor.u32 %v174_v21, %v173_v9  ;;  %v180_v22 = vsel %vm176_vm6, %v160_v10, %v163_v16 }
  0x30   :  { %v181_v24 = vsel %vm179_vm10, %v169_v19, 2102212464  ;;  %v184_v27 = vsel %vm176_vm6, %v163_v16, %v166_v18  ;;  %v185_v29 = vsel %vm179_vm10, %v172_v17, 920167782  ;;  %v188_v28 = vsel %vm176_vm6, %v166_v18, %v169_v19 }
  0x31   :  { %v182_v26 = vsel %vm178_vm9, %v166_v18, %v181_v24  ;;  %v100_v30 = vadd.s32 536870912, %v99_v25  ;;  %v186_v31 = vsel %vm178_vm9, %v169_v19, %v185_v29  ;;  %v189_v32 = vsel %vm179_vm10, %v175_v20, 1326507024 }
  0x32   :  { %v183_v33 = vsel %vm177_vm8, %v180_v22, %v182_v26  ;;  %v187_v34 = vsel %vm177_vm8, %v184_v27, %v186_v31  ;;  %v190_v35 = vsel %vm178_vm9, %v172_v17, %v189_v32  ;;  %v95_v55 = vadd.s32 %v519_v61, %v516_v60 }
  0x33   :  { %v101_v36 = vshrl.u32 %v100_v30, 30  ;;  %v191_v37 = vsel %vm177_vm8, %v188_v28, %v190_v35  ;;  %v532_v38 = vmul.u32.u64.low %v192_v58, %v187_v34  ;;  %v533_v39 = vmul.u32.u64.high %v192_v58, %v187_v34, %v532_v38 }
  0x34   :  { %v535_v40 = vmul.u32.u64.low %v192_v58, %v191_v37  ;;  %v536_v41 = vmul.u32.u64.high %v192_v58, %v191_v37, %v535_v40  ;;  %v199_v43 = vmul.u32 %v192_v58, %v183_v33  ;;  %vm145_vm1 = vcmp.le.f32.partialorder %v144_v8, 0.7853982 }
  0x35   :  { %v102_v42 = vshll.u32 %v101_v36, 30  ;;  %v202_v45 = vadd.s32 1, %v533_v39  ;;  %v125_v26 = vsub.s32 4, %v101_v36  ;;  %vm131_vm5 = vweird.f32 %v494_v0 }
  0x36   :  { %vm201_vm11 = vc.u32 %v536_v41, %v532_v38  ;;  %v200_v14 = vadd.s32 %v532_v38, %v536_v41 }
  0x37   :  { %v103_v44 = vsub.s32 %v99_v25, %v102_v42  ;;  %v203_v47 = vsel %vm201_vm11, %v202_v45, %v533_v39  ;;  %v126_v28 = vsel %vm41_vm14, %v125_v26, %v101_v36 }
  0x38   :  { %v204_v48 = vadd.s32 %v203_v47, %v199_v43  ;;  %v128_v33 = vsel %vm546_vm15, 0, %v126_v28 }
  0x39   :  { %v105_v46 = vsub.s32 0, %v103_v44  ;;  %v132_v38 = vand.u32 3, %v128_v33 }
  0x3a   :  { %v205_v50 = vadd.s32 536870912, %v204_v48 }
  0x3b   :  { %v374_v49 = vmin.u32 %v105_v46, %v103_v44  ;;  %vm134_vm2 = vcmp.eq.s32.totalorder %v132_v38, 0  ;;  %vm137_vm3 = vcmp.eq.s32.totalorder %v132_v38, 2  ;;  %vm133_vm4 = vcmp.lt.s32.totalorder %v132_v38, 2 }
  0x3c   :  { %v206_v52 = vshrl.u32 %v205_v50, 30  ;;  %v142_v50 = vstv %s37_s0 }
  0x3d   :  { %v107_v51 = vclz %v374_v49 }
  0x3e   :  { %v207_v54 = vshll.u32 %v206_v52, 30  ;;  %v230_v31 = vsub.s32 4, %v206_v52 }
  0x3f   :  { %v375_v53 = vadd.s32 4294967294, %v107_v51 }
  0x40   :  { %v208_v57 = vsub.s32 %v204_v48, %v207_v54  ;;  %v231_v35 = vsel %vm146_vm0, %v230_v31, %v206_v52 }
  0x41   :  { %vm376_vm12 = vcmp.lt.s32.totalorder %v375_v53, 0  ;;  %v233_v36 = vsel %vm145_vm1, 0, %v231_v35 }
  0x42   :  { %v110_v56 = vsel %vm376_vm12, 0, %v375_v53  ;;  %v210_v63 = vsub.s32 0, %v208_v57  ;;  %v341_v8 = vadd.s32 3, %v233_v36  ;;  %v237_v45 = vand.u32 3, %v233_v36 }
  0x43   :  { %v111_v58 = vsub.s32 32, %v110_v56  ;;  %v112_v59 = vshll.u32 %v103_v44, %v110_v56  ;;  %v115_v62 = vsub.s32 4294967266, %v110_v56  ;;  %vm236_vm12 = vweird.f32 %v498_v3 }
  0x44   :  { %v378_v5 = vmin.u32 %v210_v63, %v208_v57  ;;  %v342_v46 = vand.u32 3, %v341_v8  ;;  %vm242_vm6 = vcmp.eq.s32.totalorder %v237_v45, 2  ;;  %vm239_vm8 = vcmp.eq.s32.totalorder %v237_v45, 0 }
  0x45   :  { %v113_v2 = vshrl.u32 %v95_v55, %v111_v58  ;;  %v116_v4 = vadd.s32 127, %v115_v62  ;;  %vm238_vm10 = vcmp.lt.s32.totalorder %v237_v45, 2  ;;  %v352_v58 = vstv %s563_s1 }
  0x46   :  { %v212_v9 = vclz %v378_v5  ;;  %vm347_vm7 = vcmp.eq.s32.totalorder %v342_v46, 2  ;;  %vm344_vm9 = vcmp.eq.s32.totalorder %v342_v46, 0  ;;  %vm343_vm11 = vcmp.lt.s32.totalorder %v342_v46, 2 }
  0x47   :  { %v114_v6 = vor.u32 %v113_v2, %v112_v59  ;;  %v117_v7 = vshll.u32 %v116_v4, 23 }
  0x48   :  { %v379_v12 = vadd.s32 4294967294, %v212_v9 }
  0x49   :  { %v118_v10 = vor.u32 4788187, %v117_v7  ;;  %v121_v11 = vcvt.s32.f32 %v114_v6 }
  0x4a   :  { %vm380_vm13 = vcmp.lt.s32.totalorder %v379_v12, 0 }
  0x4b   :  { %v119_v13 = vand.u32 2147483647, %v118_v10  ;;  %v215_v61 = vsel %vm380_vm13, 0, %v379_v12 }
  0x4c   :  { %v216_v15 = vsub.s32 32, %v215_v61  ;;  %v217_v16 = vshll.u32 %v208_v57, %v215_v61  ;;  %v220_v18 = vsub.s32 4294967266, %v215_v61 }
  0x4d   :  { %v122_v60 = vmul.f32 %v121_v11, %v119_v13 }
  0x4e   :  { %v218_v23 = vshrl.u32 %v200_v14, %v216_v15  ;;  %v221_v17 = vadd.s32 127, %v220_v18 }
  0x4f   :  { %v123_v21 = vxor.u32 2147483648, %v122_v60 }
  0x50   :  { %v219_v22 = vor.u32 %v218_v23, %v217_v16  ;;  %v222_v24 = vshll.u32 %v221_v17, 23 }
  0x51   :  { %v124_v25 = vsel %vm41_vm14, %v123_v21, %v122_v60 }
  0x52   :  { %v127_v20 = vsel %vm546_vm15, %v494_v0, %v124_v25  ;;  %v223_v27 = vor.u32 4788187, %v222_v24  ;;  %v226_v1 = vcvt.s32.f32 %v219_v22 }
  0x53   :  { %402 = vcosq.f32 %v127_v20 }
  0x54   :  { %404 = vsinq.f32 %v127_v20  ;;  %v224_v29 = vand.u32 2147483647, %v223_v27 }
  0x56   :  { %v227_v30 = vmul.f32 %v226_v1, %v224_v29 }
  0x58   :  { %v228_v32 = vxor.u32 2147483648, %v227_v30 }
  0x5a   :  { %v229_v34 = vsel %vm146_vm0, %v228_v32, %v227_v30 }
  0x5b   :  { %v232_v37 = vsel %vm145_vm1, %v498_v3, %v229_v34 }
  0x5c   :  { %406 = vcosq.f32 %v232_v37 }
  0x5d   :  { %408 = vsinq.f32 %v232_v37 }
  0x60   :  { %v403_v39 = vpop.eup %402 }
  0x61   :  { %v405_v40 = vpop.eup %404  ;;  %v138_v41 = vxor.u32 2147483648, %v403_v39 }
  0x62   :  { %v135_v42 = vxor.u32 2147483648, %v405_v40 }
  0x63   :  { %v139_v44 = vsel %vm137_vm3, %v138_v41, %v405_v40 }
  0x64   :  { %v136_v43 = vsel %vm134_vm2, %v403_v39, %v135_v42 }
  0x65   :  { %v140_v47 = vsel %vm133_vm4, %v136_v43, %v139_v44 }
  0x66   :  { %v141_v49 = vsel %vm131_vm5, nan, %v140_v47 }
  0x67   :  { %v143_v54 = vmul.f32 %v142_v50, %v141_v49 }
  0x69   :  { %v407_v48 = vpop.eup %406 }
  0x6a   :  { %v409_v51 = vpop.eup %408  ;;  %v243_v52 = vxor.u32 2147483648, %v407_v48 }
  0x6b   :  { %v240_v53 = vxor.u32 2147483648, %v409_v51 }
  0x6c   :  { %v244_v55 = vsel %vm242_vm6, %v243_v52, %v409_v51  ;;  %v349_v56 = vsel %vm347_vm7, %v243_v52, %v409_v51 }
  0x6d   :  { %v241_v0 = vsel %vm239_vm8, %v407_v48, %v240_v53  ;;  %v346_v57 = vsel %vm344_vm9, %v407_v48, %v240_v53 }
  0x6e   :  { %v245_v59 = vsel %vm238_vm10, %v241_v0, %v244_v55  ;;  %v350_v62 = vsel %vm343_vm11, %v346_v57, %v349_v56 }
  0x6f   :  { %v246_v63 = vsel %vm236_vm12, nan, %v245_v59  ;;  %v351_v2 = vsel %vm236_vm12, nan, %v350_v62 }
  0x70   :  { %v247_v4 = vmul.f32 %v246_v63, %v143_v54  ;;  %v353_v5 = vmul.f32 %v352_v58, %v351_v2 }
  0x72   :  { %v354_v6 = vsub.f32 %v247_v4, %v353_v5 }
  0x74   :  { %355 = vst [vmem:[#allocation7] sm:$0x1] %v354_v6 }
  0x75   :  { %449 = shalt.err (!%p446_p9)
}
  0x76   :  { %365 = dma.vmem_to_hbm [thread:$0]  %s363_s18, 16, %s573_s2, [#allocation4]  }
  0x77   :  { %462 = dma.done.wait [#allocation4], 16  }
  0x78   :  { %463 = vsyncadd [#allocation4], 4294967280 }
  0x79   :  { %369 = vsyncpa [#allocation3], 1 }
  0x7a   :  { %370 = vsyncpa [#allocation4], 1 }
  0x7b   :  { %371 = vsyncpa [#allocation5], 1 }

</bundles_post_ra>
